<compile_context>
chip_gen: v7x
topology: tpu7x:2x2x1
jax: 0.10.0
libtpu: 0.0.40
codegen_flags: <defaults>
</compile_context>

<pallas_src>
import jax
import jax.numpy as jnp
from jax.experimental import pallas as pl
from jax.experimental.pallas import tpu as pltpu


def _linear_add_relu_kernel(x_ref, p_ref, o_ref):
    # x_ref: (B*K,) float32 SMEM  — activations, row-major flattened
    # p_ref: (K+1, N) float32 VMEM — rows [0:K] = W^T, row [K] = bias + other
    # o_ref: (B, N) float32 VMEM
    B, N = o_ref.shape
    K = p_ref.shape[0] - 1

    p = p_ref[...]                       # single full-tile VMEM load
    bo = p[K:K + 1, :]                   # (1, N) fused bias + __other__

    rows = []
    for b in range(B):                   # B, K are tiny & static -> unrolled
        acc = bo
        for k in range(K):
            # scalar (SMEM) * row (sublane slice): pure VPU FMA, no XLU.
            acc = acc + x_ref[b * K + k] * p[k:k + 1, :]
        rows.append(acc)
    out = rows[0] if B == 1 else jnp.concatenate(rows, axis=0)
    o_ref[...] = jnp.maximum(out, 0.0).astype(o_ref.dtype)


def prepare_weight(weight):
    """Hoisted host glue: call once per parameter update, not per forward."""
    return jnp.asarray(weight, jnp.float32).T          # (K, N) = (3, 8)


@jax.jit
def linear_add_relu(x2, wt, bias, other):
    """relu(x2 @ W.T + bias + other) with W.T pre-transposed as `wt`.

    x2: (B, 3); wt: (3, 8); bias: (8,); other broadcastable to (1, 8).
    """
    B, K = x2.shape
    N = wt.shape[1]

    # Per-call host glue (fused by XLA under jit): bias + other, then pack
    # with W^T into one (K+1, N) operand -> single vector-input DMA.
    bo = (jnp.asarray(bias, jnp.float32).reshape(1, N)
          + jnp.broadcast_to(jnp.asarray(other, jnp.float32), (1, N)))
    packed = jnp.concatenate([wt.astype(jnp.float32), bo], axis=0)   # (K+1, N)

    x_flat = x2.astype(jnp.float32).reshape(B * K)      # tiny -> SMEM scalars

    return pl.pallas_call(
        _linear_add_relu_kernel,
        out_shape=jax.ShapeDtypeStruct((B, N), jnp.float32),
        # Gridless: whole arrays resident; x via SMEM, packed params via VMEM.
        in_specs=[
            pl.BlockSpec(memory_space=pltpu.MemorySpace.SMEM),
            pl.BlockSpec(memory_space=pltpu.MemorySpace.VMEM),
        ],
        out_specs=pl.BlockSpec(memory_space=pltpu.MemorySpace.VMEM),
    )(x_flat, packed)


def reference(x2, weight, bias, other):
    return jnp.maximum(x2 @ weight.T + bias + other, 0.0)


if __name__ == "__main__":
    key = jax.random.PRNGKey(0)
    k1, k2, k3, k4 = jax.random.split(key, 4)

    # Module-implied shapes: Linear(3, 8), input x2 of shape (1, 3).
    x2 = jax.random.normal(k1, (1, 3), dtype=jnp.float32)
    weight = jax.random.normal(k2, (8, 3), dtype=jnp.float32) * 0.5
    bias = jax.random.normal(k3, (8,), dtype=jnp.float32) * 0.1
    # __other__ must broadcast against the (1, 8) linear output.
    other = jax.random.normal(k4, (1, 8), dtype=jnp.float32)

    wt = prepare_weight(weight)          # hoisted: done once, not per call

    out = linear_add_relu(x2, wt, bias, other)
    out = jax.block_until_ready(out)

    ref = reference(x2, weight, bias, other)
    assert out.shape == (1, 8)
    assert jnp.allclose(out, ref, atol=1e-5, rtol=1e-5), (out, ref)

    print("KERNEL_OK")
</pallas_src>

<mosaic_0001>
module attributes {stable_mosaic.version = 11 : i64} {
  func.func @_linear_add_relu_kernel(%arg0: memref<3xf32, #tpu.memory_space<smem>>, %arg1: memref<4x8xf32, #tpu.memory_space<vmem>>, %arg2: memref<1x8xf32, #tpu.memory_space<vmem>>) attributes {dimension_semantics = [], scalar_prefetch = 0 : i64, scratch_operands = 0 : i64, tpu.core_type = #tpu.core_type<tc>} {
    %c0 = arith.constant 0 : index
    %c0_0 = arith.constant 0 : index
    %0 = vector.load %arg1[%c0, %c0_0] : memref<4x8xf32, #tpu.memory_space<vmem>>, vector<4x8xf32>
    %1 = vector.extract_strided_slice %0 {offsets = [3, 0], sizes = [1, 8], strides = [1, 1]} : vector<4x8xf32> to vector<1x8xf32>
    %c0_1 = arith.constant 0 : index
    %2 = memref.load %arg0[%c0_1] : memref<3xf32, #tpu.memory_space<smem>>
    %3 = vector.extract_strided_slice %0 {offsets = [0, 0], sizes = [1, 8], strides = [1, 1]} : vector<4x8xf32> to vector<1x8xf32>
    %4 = vector.broadcast %2 : f32 to vector<1x8xf32>
    %5 = arith.mulf %4, %3 : vector<1x8xf32>
    %6 = arith.addf %1, %5 : vector<1x8xf32>
    %c1 = arith.constant 1 : index
    %7 = memref.load %arg0[%c1] : memref<3xf32, #tpu.memory_space<smem>>
    %8 = vector.extract_strided_slice %0 {offsets = [1, 0], sizes = [1, 8], strides = [1, 1]} : vector<4x8xf32> to vector<1x8xf32>
    %9 = vector.broadcast %7 : f32 to vector<1x8xf32>
    %10 = arith.mulf %9, %8 : vector<1x8xf32>
    %11 = arith.addf %6, %10 : vector<1x8xf32>
    %c2 = arith.constant 2 : index
    %12 = memref.load %arg0[%c2] : memref<3xf32, #tpu.memory_space<smem>>
    %13 = vector.extract_strided_slice %0 {offsets = [2, 0], sizes = [1, 8], strides = [1, 1]} : vector<4x8xf32> to vector<1x8xf32>
    %14 = vector.broadcast %12 : f32 to vector<1x8xf32>
    %15 = arith.mulf %14, %13 : vector<1x8xf32>
    %16 = arith.addf %11, %15 : vector<1x8xf32>
    %cst = arith.constant 0.000000e+00 : f32
    %17 = vector.broadcast %cst : f32 to vector<1x8xf32>
    %18 = arith.maximumf %16, %17 : vector<1x8xf32>
    %c0_2 = arith.constant 0 : index
    %c0_3 = arith.constant 0 : index
    %19 = vector.load %arg2[%c0_2, %c0_3] : memref<1x8xf32, #tpu.memory_space<vmem>>, vector<1x8xf32>
    tpu.vector_store %arg2[%c0_2, %c0_3], %18 {strides = array<i32>} : memref<1x8xf32, #tpu.memory_space<vmem>>, vector<1x8xf32>,
    return
  }
}

</mosaic_0001>

<bundles_post_ra>
// kernel: linear_add_relu.1
= control target key start
LH: loop header
LB: loop body
LE: loop exit
PB: predicated region body
PF: predicated region fallthrough
CT: control target
= control target key end

     0   :  { %7 = vsyncpa [#allocation4], 0  ;;  %s142_s0 = inlined_call_operand.vmem [shape: f32[3], index: 0, kind: input, shape index: {}]   ;;  %s143_s1 = inlined_call_operand.vmem [shape: f32[4,8], index: 1, kind: input, shape index: {}]   ;;  %s144_s2 = inlined_call_operand.hbm [shape: f32[1,8], index: 2, kind: output, shape index: {}]  }
   0x1   :  { %8 = vsyncpa [#allocation3], 0  ;;  %s15_s11 = sshll.u32 %s142_s0, 4  ;;  %s16_s11 = int_to_ptr.vmem [resolvable:$true] %s15_s11 }
   0x2   :  { %s69_s12 = scalar_lea.vmem %s16_s11, 16  ;;  %p74_p1 = scmp.lt.s32.totalorder %s16_s11, %s16_s11 }
   0x3   :  { %p70_p0 = scmp.ne.s32.totalorder %s16_s11, %s69_s12  ;;  %p75_p2 = scmp.lt.s32.totalorder %s69_s12, %s69_s12 }
   0x5   :  { %p76_p3 = por %p75_p2, %p74_p1 }
   0x7   :  { %p77_p4 = pnand %p76_p3, %p70_p0 }
   0x9   :  { %80 = shalt.err (!%p77_p4)
}
   0xa   :  { %s107_s13 = smov [#allocation2]  }
   0xb   :  { %18 = dma.vmem_to_smem %s16_s11, 16, %s107_s13, [#allocation4]  }
   0xc   :  { %103 = dma.done.wait [#allocation4], 16  }
   0xd   :  { %104 = vsyncadd [#allocation4], 4294967280 }
   0xe   :  { %24 = sfence }
   0xf   :  { %s26_s14 = sld [smem:[#allocation2]]  ;;  %s65_s15 = sld [smem:[#allocation2 + $0x1]]  ;;  %v25_v0 = vld [vmem:[%s143_s1] sm:$0xf]  ;;  %vm48_vm0 = vcmask 60419  }
  0x10   :  { %s66_s16 = sld [smem:[#allocation2 + $0x2]]  ;;  %s108_s0 = smov [#allocation5]  }
  0x11   :  { %s56_s19 = sshll.u32 %s108_s0, 4  ;;  %s57_s19 = int_to_ptr.vmem [resolvable:$true] %s56_s19 }
  0x12   :  { %s81_s20 = scalar_lea.vmem %s57_s19, 16  ;;  %s85_s1 = scalar_lea.vmem %s57_s19, 32 }
  0x13   :  { %p82_p5 = scmp.ne.s32.totalorder %s57_s19, %s81_s20  ;;  %p86_p6 = scmp.lt.s32.totalorder %s57_s19, %s57_s19 }
  0x14   :  { %p87_p7 = scmp.lt.s32.totalorder %s85_s1, %s81_s20 }
  0x15   :  { %v27_v1 = vstv %s26_s14  ;;  %v34_v2 = vstv %s65_s15 }
  0x16   :  { %v28_v3 = vmul.f32 %v27_v1, %v25_v0  ;;  %v35_v4 = vmul.f32 %v34_v2, %v25_v0  ;;  %v41_v5 = vstv %s66_s16  ;;  %p88_p8 = por %p87_p7, %p86_p6 }
  0x17   :  { %v42_v6 = vmul.f32 %v41_v5, %v25_v0 }
  0x18   :  { %v30_v7 = vrot.slane %v28_v3, 5  ;;  %v37_v8 = vrot.slane %v35_v4, 6  ;;  %p89_p9 = pnand %p88_p8, %p82_p5 }
  0x19   :  { %v44_v10 = vrot.slane %v42_v6, 7 }
  0x1a   :  { %v32_v9 = vadd.f32 %v30_v7, %v25_v0 }
  0x1c   :  { %v39_v11 = vadd.f32 %v37_v8, %v32_v9 }
  0x1e   :  { %v46_v12 = vadd.f32 %v44_v10, %v39_v11 }
  0x20   :  { %v47_v13 = vmax.f32 %v46_v12, 0.0 }
  0x22   :  { %49 = vst.msk [vmem:[#allocation5 - $0x3] sm:$0x8] %vm48_vm0, %v47_v13 }
  0x23   :  { %92 = shalt.err (!%p89_p9)
}
  0x24   :  { %s93_s23 = scalar_lea.hbm %s144_s2, 16 }
  0x25   :  { %p94_p10 = scmp.ne.s32.totalorder %s144_s2, %s93_s23  ;;  %p97_p11 = scmp.lt.u32.totalorder %s93_s23, %s144_s2 }
  0x27   :  { %p99_p12 = pnand %p97_p11, %p94_p10 }
  0x29   :  { %102 = shalt.err (!%p99_p12)
}
  0x2a   :  { %59 = dma.vmem_to_hbm [thread:$0]  %s57_s19, 16, %s144_s2, [#allocation3]  }
  0x2b   :  { %105 = dma.done.wait [#allocation3], 16  }
  0x2c   :  { %106 = vsyncadd [#allocation3], 4294967280 }
  0x2d   :  { %63 = vsyncpa [#allocation3], 1 }
  0x2e   :  { %64 = vsyncpa [#allocation4], 1 }

</bundles_post_ra>
